<compile_context>
chip_gen: v7x
topology: tpu7x:2x2x1
jax: 0.10.0
libtpu: 0.0.40
codegen_flags: <defaults>
</compile_context>

<pallas_src>
import functools

import jax
import jax.numpy as jnp
from jax.experimental import pallas as pl
from jax.experimental.pallas import tpu as pltpu


def _model_kernel(x1_ref, x2_ref, inp_ref, o_ref, acc_ref):
    k = pl.program_id(2)

    @pl.when(k == 0)
    def _init():
        acc_ref[...] = jnp.zeros_like(acc_ref)

    acc_ref[...] += jnp.dot(
        x1_ref[...], x2_ref[...], preferred_element_type=jnp.float32
    )

    @pl.when(k == pl.num_programs(2) - 1)
    def _epilogue():
        v1 = acc_ref[...] + inp_ref[...]
        v2 = jnp.exp(v1)
        # torch: sigmoid(v2) + clamp(v1, min=0.2)
        v3 = jax.nn.sigmoid(v2) + jnp.maximum(v1, 0.2)
        o_ref[...] = (v1 + v2 * v3).astype(o_ref.dtype)


def _round_up(x, m):
    return ((x + m - 1) // m) * m


@functools.partial(jax.jit, static_argnames=("tm", "tn", "tk"))
def model_forward(x1, x2, inp=None, *, tm=256, tn=256, tk=512):
    M, K = x1.shape
    K2, N = x2.shape
    assert K == K2, (x1.shape, x2.shape)
    if inp is None:
        inp = jnp.zeros((M, N), jnp.float32)
    assert inp.shape == (M, N), inp.shape

    # Clamp tiles so tiny problems don't over-pad; keep (8,128) alignment.
    tm = min(tm, _round_up(M, 8))
    tn = min(tn, _round_up(N, 128))
    tk = min(tk, _round_up(K, 128))

    Mp, Np, Kp = _round_up(M, tm), _round_up(N, tn), _round_up(K, tk)

    f32 = jnp.float32
    x1p = jnp.pad(x1.astype(f32), ((0, Mp - M), (0, Kp - K)))
    x2p = jnp.pad(x2.astype(f32), ((0, Kp - K), (0, Np - N)))
    inpp = jnp.pad(inp.astype(f32), ((0, Mp - M), (0, Np - N)))

    grid = (Mp // tm, Np // tn, Kp // tk)

    cost = pl.CostEstimate(
        flops=2 * Mp * Np * Kp,
        transcendentals=2 * Mp * Np,  # exp + sigmoid per output element
        bytes_accessed=4 * (Mp * Kp + Kp * Np + 2 * Mp * Np),
    )

    out_padded = pl.pallas_call(
        _model_kernel,
        out_shape=jax.ShapeDtypeStruct((Mp, Np), jnp.float32),
        grid_spec=pltpu.PrefetchScalarGridSpec(
            num_scalar_prefetch=0,
            grid=grid,
            in_specs=[
                pl.BlockSpec((tm, tk), lambda i, j, k: (i, k)),
                pl.BlockSpec((tk, tn), lambda i, j, k: (k, j)),
                pl.BlockSpec((tm, tn), lambda i, j, k: (i, j)),
            ],
            out_specs=pl.BlockSpec((tm, tn), lambda i, j, k: (i, j)),
            scratch_shapes=[pltpu.VMEM((tm, tn), jnp.float32)],
        ),
        compiler_params=pltpu.CompilerParams(
            dimension_semantics=("parallel", "parallel", "arbitrary"),
            vmem_limit_bytes=32 * 1024 * 1024,  # safe on v5e/v6e/v7x
        ),
        cost_estimate=cost,
    )(x1p, x2p, inpp)

    return out_padded[:M, :N]


def model_forward_ref(x1, x2, inp=None):
    v1 = x1 @ x2
    if inp is not None:
        v1 = v1 + inp
    v2 = jnp.exp(v1)
    v3 = jax.nn.sigmoid(v2) + jnp.maximum(v1, 0.2)
    return v1 + v2 * v3


if __name__ == "__main__":
    key = jax.random.PRNGKey(0)
    k1, k2, k3, k4, k5, k6 = jax.random.split(key, 6)

    # 1) The module's literal shapes: 3x3 f32 (single padded 8x128x128 tile).
    x1 = jax.random.normal(k1, (3, 3), dtype=jnp.float32)
    x2 = jax.random.normal(k2, (3, 3), dtype=jnp.float32)
    inp = jax.random.normal(k3, (3, 3), dtype=jnp.float32)

    out = jax.block_until_ready(model_forward(x1, x2, inp))
    ref = model_forward_ref(x1, x2, inp)
    assert out.shape == (3, 3)
    assert jnp.allclose(out, ref, rtol=1e-5, atol=1e-5), (out, ref)

    # 2) A larger, multi-tile problem to exercise the (i, j, k) grid,
    #    K-accumulation, and N-padding paths (grid = (2, 2, 2)).
    Mb, Kb, Nb = 320, 1024, 384
    xb1 = 0.1 * jax.random.normal(k4, (Mb, Kb), dtype=jnp.float32)
    xb2 = 0.1 * jax.random.normal(k5, (Kb, Nb), dtype=jnp.float32)
    inpb = 0.1 * jax.random.normal(k6, (Mb, Nb), dtype=jnp.float32)

    outb = jax.block_until_ready(model_forward(xb1, xb2, inpb))
    refb = model_forward_ref(xb1, xb2, inpb)
    assert outb.shape == (Mb, Nb)
    assert jnp.allclose(outb, refb, rtol=1e-4, atol=1e-4)

    print("KERNEL_OK")
</pallas_src>

<mosaic_0001>
module attributes {stable_mosaic.version = 11 : i64} {
  func.func @_model_kernel(%arg0: i32, %arg1: i32, %arg2: i32, %arg3: memref<8x128xf32, #tpu.memory_space<vmem>>, %arg4: memref<128x128xf32, #tpu.memory_space<vmem>>, %arg5: memref<8x128xf32, #tpu.memory_space<vmem>>, %arg6: memref<8x128xf32, #tpu.memory_space<vmem>>, %arg7: memref<8x128xf32, #tpu.memory_space<vmem>>) attributes {dimension_semantics = [#tpu.dimension_semantics<parallel>, #tpu.dimension_semantics<parallel>, #tpu.dimension_semantics<arbitrary>], iteration_bounds = array<i64: 1, 1, 1>, scalar_prefetch = 0 : i64, scratch_operands = 1 : i64, tpu.core_type = #tpu.core_type<tc>, window_params = [{transform_indices = @transform_0, window_bounds = array<i64: 8, 128>}, {transform_indices = @transform_1, window_bounds = array<i64: 128, 128>}, {transform_indices = @transform_2, window_bounds = array<i64: 8, 128>}, {transform_indices = @transform_3, window_bounds = array<i64: 8, 128>}]} {
    %c0_i32 = arith.constant 0 : i32
    %0 = arith.cmpi eq, %arg2, %c0_i32 : i32
    %1 = arith.extui %0 : i1 to i32
    %c0_i32_0 = arith.constant 0 : i32
    %2 = arith.cmpi ne, %1, %c0_i32_0 : i32
    scf.if %2 {
      %cst_10 = arith.constant 0.000000e+00 : f32
      %12 = vector.broadcast %cst_10 : f32 to vector<8x128xf32>
      %c0_11 = arith.constant 0 : index
      %c0_12 = arith.constant 0 : index
      %13 = vector.load %arg7[%c0_11, %c0_12] : memref<8x128xf32, #tpu.memory_space<vmem>>, vector<8x128xf32>
      tpu.vector_store %arg7[%c0_11, %c0_12], %12 {strides = array<i32>} : memref<8x128xf32, #tpu.memory_space<vmem>>, vector<8x128xf32>,
    } else {
    }
    %c0 = arith.constant 0 : index
    %c0_1 = arith.constant 0 : index
    %3 = vector.load %arg7[%c0, %c0_1] : memref<8x128xf32, #tpu.memory_space<vmem>>, vector<8x128xf32>
    %c0_2 = arith.constant 0 : index
    %c0_3 = arith.constant 0 : index
    %4 = vector.load %arg3[%c0_2, %c0_3] : memref<8x128xf32, #tpu.memory_space<vmem>>, vector<8x128xf32>
    %c0_4 = arith.constant 0 : index
    %c0_5 = arith.constant 0 : index
    %5 = vector.load %arg4[%c0_4, %c0_5] : memref<128x128xf32, #tpu.memory_space<vmem>>, vector<128x128xf32>
    %cst = arith.constant dense<0.000000e+00> : vector<8x128xf32>
    %6 = tpu.matmul %4, %5, %cst {dimension_numbers = #tpu.dot_dimension_numbers<[1], [0], [0], [1], [0, 0, 1, 1], [], []>} : vector<8x128xf32>, vector<128x128xf32>, vector<8x128xf32> -> vector<8x128xf32>
    %7 = arith.addf %3, %6 : vector<8x128xf32>
    %c0_6 = arith.constant 0 : index
    %c0_7 = arith.constant 0 : index
    %8 = vector.load %arg7[%c0_6, %c0_7] : memref<8x128xf32, #tpu.memory_space<vmem>>, vector<8x128xf32>
    tpu.vector_store %arg7[%c0_6, %c0_7], %7 {strides = array<i32>} : memref<8x128xf32, #tpu.memory_space<vmem>>, vector<8x128xf32>,
    %c0_i32_8 = arith.constant 0 : i32
    %9 = arith.cmpi eq, %arg2, %c0_i32_8 : i32
    %10 = arith.extui %9 : i1 to i32
    %c0_i32_9 = arith.constant 0 : i32
    %11 = arith.cmpi ne, %10, %c0_i32_9 : i32
    scf.if %11 {
      %c0_10 = arith.constant 0 : index
      %c0_11 = arith.constant 0 : index
      %12 = vector.load %arg7[%c0_10, %c0_11] : memref<8x128xf32, #tpu.memory_space<vmem>>, vector<8x128xf32>
      %c0_12 = arith.constant 0 : index
      %c0_13 = arith.constant 0 : index
      %13 = vector.load %arg5[%c0_12, %c0_13] : memref<8x128xf32, #tpu.memory_space<vmem>>, vector<8x128xf32>
      %14 = arith.addf %12, %13 : vector<8x128xf32>
      %15 = math.exp %14 : vector<8x128xf32>
      %16 = arith.negf %15 : vector<8x128xf32>
      %17 = math.exp %16 : vector<8x128xf32>
      %cst_14 = arith.constant 1.000000e+00 : f32
      %18 = vector.broadcast %cst_14 : f32 to vector<8x128xf32>
      %19 = arith.addf %18, %17 : vector<8x128xf32>
      %20 = arith.divf %18, %19 : vector<8x128xf32>
      %cst_15 = arith.constant 2.000000e-01 : f32
      %21 = vector.broadcast %cst_15 : f32 to vector<8x128xf32>
      %22 = arith.maximumf %14, %21 : vector<8x128xf32>
      %23 = arith.addf %20, %22 : vector<8x128xf32>
      %24 = arith.mulf %15, %23 : vector<8x128xf32>
      %25 = arith.addf %14, %24 : vector<8x128xf32>
      %c0_16 = arith.constant 0 : index
      %c0_17 = arith.constant 0 : index
      %26 = vector.load %arg6[%c0_16, %c0_17] : memref<8x128xf32, #tpu.memory_space<vmem>>, vector<8x128xf32>
      tpu.vector_store %arg6[%c0_16, %c0_17], %25 {strides = array<i32>} : memref<8x128xf32, #tpu.memory_space<vmem>>, vector<8x128xf32>,
    } else {
    }
    return
  }
  func.func @transform_0(%arg0: i32, %arg1: i32, %arg2: i32) -> (i32, i32) {
    %c0_i32 = arith.constant 0 : i32
    return %arg0, %arg2 : i32, i32
  }
  func.func @transform_1(%arg0: i32, %arg1: i32, %arg2: i32) -> (i32, i32) {
    %c0_i32 = arith.constant 0 : i32
    return %arg2, %arg1 : i32, i32
  }
  func.func @transform_2(%arg0: i32, %arg1: i32, %arg2: i32) -> (i32, i32) {
    %c0_i32 = arith.constant 0 : i32
    return %arg0, %arg1 : i32, i32
  }
  func.func @transform_3(%arg0: i32, %arg1: i32, %arg2: i32) -> (i32, i32) {
    %c0_i32 = arith.constant 0 : i32
    return %arg0, %arg1 : i32, i32
  }
}

</mosaic_0001>

<bundles_post_ra>
// kernel: model_forward.1
= control target key start
LH: loop header
LB: loop body
LE: loop exit
PB: predicated region body
PF: predicated region fallthrough
CT: control target
= control target key end

     0   :  { %v218_v0 = vmov 0.0|0.0   ;;  %vm219_vm0 = vmmov 0   ;;  %v220_v4 = vmov 0.0   ;;  %s298_s1 = inlined_call_operand.vmem [shape: f32[128,128], index: 1, kind: input, shape index: {}]   ;;  %s299_s0 = inlined_call_operand.vmem [shape: f32[8,128], index: 0, kind: input, shape index: {}]   ;;  %s300_s2 = inlined_call_operand.vmem [shape: f32[8,128], index: 2, kind: input, shape index: {}]   ;;  %s301_s3 = inlined_call_operand.vmem [shape: f32[8,128], index: 3, kind: output, shape index: {}]  }
   0x1   :  { %185 = vmatprep.subr.bf16.mxu0 %v218_v0  ;;  %v21_v1 = vld [vmem:[%s298_s1] sm:$0xff]  ;;  %v22_v2 = vld [vmem:[%s298_s1 + $0x8] sm:$0xff]  ;;  %v23_v3 = vld [vmem:[%s298_s1 + $0x10] sm:$0xff]  ;;  %182 = vmatprep.mubr.msk.f32.mxu0 %vm219_vm0, %v220_v4 }
   0x2   :  { %v186_v5 = vpack.c.bf16 %v22_v2, %v21_v1  ;;  %v24_v6 = vld [vmem:[%s298_s1 + $0x18] sm:$0xff]  ;;  %v25_v8 = vld [vmem:[%s298_s1 + $0x20] sm:$0xff]  ;;  %v26_v9 = vld [vmem:[%s298_s1 + $0x28] sm:$0xff] }
   0x3   :  { %v189_v7 = vpack.c.bf16 %v24_v6, %v23_v3  ;;  %v192_v10 = vpack.c.bf16 %v26_v9, %v25_v8  ;;  %v27_v11 = vld [vmem:[%s298_s1 + $0x30] sm:$0xff]  ;;  %v28_v12 = vld [vmem:[%s298_s1 + $0x38] sm:$0xff]  ;;  %v29_v14 = vld [vmem:[%s298_s1 + $0x40] sm:$0xff] }
   0x4   :  { %187 = vmatpush3.bf16.msra.mxu0 %v186_v5  ;;  %v195_v13 = vpack.c.bf16 %v28_v12, %v27_v11  ;;  %v30_v15 = vld [vmem:[%s298_s1 + $0x48] sm:$0xff]  ;;  %v31_v17 = vld [vmem:[%s298_s1 + $0x50] sm:$0xff]  ;;  %v32_v18 = vld [vmem:[%s298_s1 + $0x58] sm:$0xff] }
   0x5   :  { %188 = vmatprep.subr.bf16.mxu0 %v218_v0  ;;  %v198_v16 = vpack.c.bf16 %v30_v15, %v29_v14  ;;  %v201_v19 = vpack.c.bf16 %v32_v18, %v31_v17  ;;  %v33_v20 = vld [vmem:[%s298_s1 + $0x60] sm:$0xff]  ;;  %v34_v21 = vld [vmem:[%s298_s1 + $0x68] sm:$0xff]  ;;  %v35_v23 = vld [vmem:[%s298_s1 + $0x70] sm:$0xff] }
   0x6   :  { %v204_v22 = vpack.c.bf16 %v34_v21, %v33_v20  ;;  %v36_v24 = vld [vmem:[%s298_s1 + $0x78] sm:$0xff]  ;;  %v20_v26 = vld [vmem:[%s299_s0] sm:$0xff] }
   0x7   :  { %v207_v25 = vpack.c.bf16 %v36_v24, %v35_v23  ;;  %v113_v27 = vld [vmem:[%s300_s2] sm:$0xff] }
   0x8   :  { %190 = vmatpush3.bf16.msra.mxu0 %v189_v7 }
   0x9   :  { %191 = vmatprep.subr.bf16.mxu0 %v218_v0 }
   0xc   :  { %193 = vmatpush3.bf16.msra.mxu0 %v192_v10 }
   0xd   :  { %194 = vmatprep.subr.bf16.mxu0 %v218_v0 }
  0x10   :  { %196 = vmatpush3.bf16.msra.mxu0 %v195_v13 }
  0x11   :  { %197 = vmatprep.subr.bf16.mxu0 %v218_v0 }
  0x14   :  { %199 = vmatpush3.bf16.msra.mxu0 %v198_v16 }
  0x15   :  { %200 = vmatprep.subr.bf16.mxu0 %v218_v0 }
  0x18   :  { %202 = vmatpush3.bf16.msra.mxu0 %v201_v19 }
  0x19   :  { %203 = vmatprep.subr.bf16.mxu0 %v218_v0 }
  0x1c   :  { %205 = vmatpush3.bf16.msra.mxu0 %v204_v22 }
  0x1d   :  { %206 = vmatprep.subr.bf16.mxu0 %v218_v0 }
  0x20   :  { %208 = vmatpush3.bf16.msra.mxu0 %v207_v25 }
  0x23   :  { %183 = vmatmul.mubr.f32.vlgmr.msra.gmra.mrb[0].mxu0 %v20_v26 }
  0xf6   :  { %v103_v28 = vpop.f32.mrb[0].mxu0 }
  0xf7   :  { %v114_v29 = vadd.f32 %v113_v27, %v103_v28  ;;  %v184_v30 = vpop.f32.mrb[1].mxu0 }
  0xf9   :  { %v115_v31 = vmul.f32 1.442695, %v114_v29  ;;  %v123_v36 = vmax.f32 %v114_v29, 0.2 }
  0xfb   :  { %212 = vpow2.f32 %v115_v31 }
 0x105   :  { %v213_v32 = vpop.eup %212 }
 0x106   :  { %v132_v33 = vmul.f32 -1.442695, %v213_v32 }
 0x108   :  { %214 = vpow2.f32 %v132_v33 }
 0x112   :  { %v215_v34 = vpop.eup %214 }
 0x113   :  { %v120_v35 = vadd.f32 1.0, %v215_v34 }
 0x115   :  { %216 = vrcp.f32 %v120_v35 }
 0x11f   :  { %v217_v37 = vpop.eup %216 }
 0x120   :  { %v124_v38 = vadd.f32 %v217_v37, %v123_v36 }
 0x122   :  { %v125_v39 = vmul.f32 %v213_v32, %v124_v38 }
 0x124   :  { %v126_v40 = vadd.f32 %v125_v39, %v114_v29 }
 0x126   :  { %127 = vst [vmem:[%s301_s3] sm:$0xff] %v126_v40 }

</bundles_post_ra>
